<compile_context>
chip_gen: v5e
topology: v5e:2x2
jax: 0.10.0
libtpu: 0.0.40
codegen_flags: <defaults>
</compile_context>

<pallas_src>
import functools

import jax
import jax.numpy as jnp
from jax import lax
from jax.experimental import pallas as pl
from jax.experimental.pallas import tpu as pltpu

INPUT_SIZE = 6
HL_1 = 16
HL_2 = 32
QUANTILES = 51
NUM_ACTIONS = 3
OUT_DIM = NUM_ACTIONS * QUANTILES          # 153
BN_EPS = 1e-5

# Dispatch / tiling knobs (sweep per generation; safe defaults for v5e/v6e/v7x).
FUSED_MAX_B = 1024          # <= this: single fused whole-batch-in-VMEM launch
STATS_TILE_B = 16384        # passes 1-2 batch tile (only ~24 B/row of x traffic)
OUT_TILE_B = 4096           # pass 3 batch tile (sized by the (tile,153) f32 store)
NCORES = 2                  # leading "parallel" core axis for the stats passes
VMEM_LIMIT_BYTES = 32 * 1024 * 1024


def _round_up(n, m):
    return (n + m - 1) // m * m


def _gelu_exact(x):
    # F.gelu default (exact, erf-based): 0.5 * x * (1 + erf(x / sqrt(2)))
    return 0.5 * x * (1.0 + lax.erf(x * 0.7071067811865475))


# ---------------------------------------------------------------------------
# Fused single-block kernel (small / medium batch): one launch, full-batch BN.
# ---------------------------------------------------------------------------
def _fused_kernel(x_ref, w1_ref, b1_ref, w2_ref, b2_ref, w3_ref, b3_ref,
                  out_ref, *, inv_n):
    def bn(a):
        mean = jnp.sum(a, axis=0, keepdims=True) * inv_n
        d = a - mean
        var = jnp.sum(d * d, axis=0, keepdims=True) * inv_n   # two-pass (free here)
        return d * lax.rsqrt(var + BN_EPS)

    x = x_ref[...]
    a1 = _gelu_exact(
        jnp.dot(x, w1_ref[...], preferred_element_type=jnp.float32) + b1_ref[...])
    h1 = bn(a1)
    a2 = _gelu_exact(
        jnp.dot(h1, w2_ref[...], preferred_element_type=jnp.float32) + b2_ref[...])
    h2 = bn(a2)
    out_ref[...] = (
        jnp.dot(h2, w3_ref[...], preferred_element_type=jnp.float32) + b3_ref[...]
    ).astype(out_ref.dtype)


def _forward_fused(x, folded):
    w1, b1, w2f, b2f, w3f, b3f = folded
    B = x.shape[0]
    vmem = pl.BlockSpec(memory_space=pltpu.MemorySpace.VMEM)
    w_bytes = (INPUT_SIZE * HL_1 + HL_1 + HL_1 * HL_2 + HL_2
               + HL_2 * OUT_DIM + OUT_DIM)
    cost = pl.CostEstimate(
        flops=int(2 * B * (INPUT_SIZE * HL_1 + HL_1 * HL_2 + HL_2 * OUT_DIM)),
        transcendentals=int(B * (HL_1 + HL_2)),
        bytes_accessed=int(4 * (B * (INPUT_SIZE + OUT_DIM) + w_bytes)),
    )
    return pl.pallas_call(
        functools.partial(_fused_kernel, inv_n=1.0 / B),
        out_shape=jax.ShapeDtypeStruct((B, OUT_DIM), jnp.float32),
        in_specs=[vmem] * 7,
        out_specs=vmem,
        compiler_params=pltpu.CompilerParams(vmem_limit_bytes=VMEM_LIMIT_BYTES),
        cost_estimate=cost,
    )(x, w1, b1, w2f, b2f, w3f, b3f)


# ---------------------------------------------------------------------------
# Tiled 3-pass path (large batch): recompute-from-x + full-batch BN statistics.
#   Pass 1: per-core partial (sum, sumsq) of a1 = GELU(x@w1+b1)
#   Pass 2: per-core partial (sum, sumsq) of a2 = GELU(BN1(a1)@w2'+b2')
#   Pass 3: out = BN2(a2) @ w3' + b3'   (writes exactly (B, 153))
# ---------------------------------------------------------------------------
def _accumulate_stats(a, sum_ref, sq_ref, tile_idx, tile_b, n_valid):
    """Accumulate sum / sum-of-squares of the valid rows of `a` into the
    per-core resident accumulators. Interior tiles skip the mask entirely."""
    shape = sum_ref.shape

    def add(av):
        s = jnp.sum(av, axis=0, keepdims=True)
        q = jnp.sum(av * av, axis=0, keepdims=True)
        sum_ref[...] += jnp.broadcast_to(s, shape)
        sq_ref[...] += jnp.broadcast_to(q, shape)

    row0 = tile_idx * tile_b

    @pl.when(row0 + tile_b <= n_valid)          # fully in-bounds tile
    def _():
        add(a)

    @pl.when(row0 + tile_b > n_valid)           # boundary / duplicate tile
    def _():
        rows = row0 + lax.broadcasted_iota(jnp.int32, (a.shape[0], 1), 0)
        add(jnp.where(rows < n_valid, a, 0.0))  # where() is NaN-safe vs garbage


def _finalize_stats(s_ref, q_ref, inv_n):
    """Combine per-core partial sums and finalize to (mean, rsqrt(var+eps))."""
    sv = s_ref[...]
    qv = q_ref[...]
    s = sv[0:1, :]
    q = qv[0:1, :]
    for c in range(1, NCORES):
        s = s + sv[8 * c:8 * c + 1, :]
        q = q + qv[8 * c:8 * c + 1, :]
    mu = s * inv_n
    var = q * inv_n - mu * mu                   # one-pass variance (see header)
    return mu, lax.rsqrt(var + BN_EPS)


def _stats1_kernel(x_ref, w1_ref, b1_ref, sum_ref, sq_ref, *,
                   npc, tile_b, n_valid):
    c = pl.program_id(0)
    i = pl.program_id(1)

    @pl.when(i == 0)
    def _():
        sum_ref[...] = jnp.zeros_like(sum_ref)
        sq_ref[...] = jnp.zeros_like(sq_ref)

    a1 = _gelu_exact(
        jnp.dot(x_ref[...], w1_ref[...], preferred_element_type=jnp.float32)
        + b1_ref[...])
    _accumulate_stats(a1, sum_ref, sq_ref, c * npc + i, tile_b, n_valid)


def _stats2_kernel(x_ref, s1_ref, q1_ref, w1_ref, b1_ref, w2_ref, b2_ref,
                   sum_ref, sq_ref, *, npc, tile_b, n_valid, inv_n):
    c = pl.program_id(0)
    i = pl.program_id(1)

    @pl.when(i == 0)
    def _():
        sum_ref[...] = jnp.zeros_like(sum_ref)
        sq_ref[...] = jnp.zeros_like(sq_ref)

    mu1, inv1 = _finalize_stats(s1_ref, q1_ref, inv_n)
    a1 = _gelu_exact(
        jnp.dot(x_ref[...], w1_ref[...], preferred_element_type=jnp.float32)
        + b1_ref[...])
    h1 = (a1 - mu1) * inv1
    a2 = _gelu_exact(
        jnp.dot(h1, w2_ref[...], preferred_element_type=jnp.float32)
        + b2_ref[...])
    _accumulate_stats(a2, sum_ref, sq_ref, c * npc + i, tile_b, n_valid)


def _final_kernel(x_ref, s1_ref, q1_ref, s2_ref, q2_ref,
                  w1_ref, b1_ref, w2_ref, b2_ref, w3_ref, b3_ref,
                  out_ref, *, inv_n):
    mu1, inv1 = _finalize_stats(s1_ref, q1_ref, inv_n)
    mu2, inv2 = _finalize_stats(s2_ref, q2_ref, inv_n)
    a1 = _gelu_exact(
        jnp.dot(x_ref[...], w1_ref[...], preferred_element_type=jnp.float32)
        + b1_ref[...])
    h1 = (a1 - mu1) * inv1
    a2 = _gelu_exact(
        jnp.dot(h1, w2_ref[...], preferred_element_type=jnp.float32)
        + b2_ref[...])
    h2 = (a2 - mu2) * inv2
    out_ref[...] = (
        jnp.dot(h2, w3_ref[...], preferred_element_type=jnp.float32) + b3_ref[...]
    ).astype(out_ref.dtype)


def _forward_tiled(x, folded, *, stats_tile_b=STATS_TILE_B,
                   out_tile_b=OUT_TILE_B):
    w1, b1, w2f, b2f, w3f, b3f = folded
    B = x.shape[0]
    inv_n = 1.0 / B

    # --- stats passes (1 & 2): (core, tile) grid, per-core partial sums -----
    stats_tile_b = _round_up(max(8, min(int(stats_tile_b), _round_up(B, 8))), 8)
    n_tiles = pl.cdiv(B, stats_tile_b)
    npc = pl.cdiv(n_tiles, NCORES)             # tiles per core

    def x_map(c, i):
        # Clamp so no block is fully out of bounds; the duplicate tile this
        # creates is fully masked out of the statistics in-kernel.
        return (jnp.minimum(c * npc + i, n_tiles - 1), 0)

    const2 = lambda c, i: (0, 0)
    core_out = lambda c, i: (c, 0)

    stats_params = pltpu.CompilerParams(
        dimension_semantics=("parallel", "arbitrary"),
        vmem_limit_bytes=VMEM_LIMIT_BYTES)

    stat_rows = NCORES * 8
    bytes_x = 4 * B * INPUT_SIZE

    sum1, sq1 = pl.pallas_call(
        functools.partial(_stats1_kernel, npc=npc, tile_b=stats_tile_b,
                          n_valid=B),
        grid=(NCORES, npc),
        out_shape=(jax.ShapeDtypeStruct((stat_rows, HL_1), jnp.float32),
                   jax.ShapeDtypeStruct((stat_rows, HL_1), jnp.float32)),
        in_specs=[pl.BlockSpec((stats_tile_b, INPUT_SIZE), x_map),
                  pl.BlockSpec((INPUT_SIZE, HL_1), const2),
                  pl.BlockSpec((1, HL_1), const2)],
        out_specs=(pl.BlockSpec((8, HL_1), core_out),
                   pl.BlockSpec((8, HL_1), core_out)),
        compiler_params=stats_params,
        cost_estimate=pl.CostEstimate(
            flops=int(2 * B * INPUT_SIZE * HL_1 + 6 * B * HL_1),
            transcendentals=int(B * HL_1),
            bytes_accessed=int(bytes_x + 4 * (INPUT_SIZE + 1) * HL_1
                               + 4 * 2 * stat_rows * HL_1)),
    )(x, w1, b1)

    sum2, sq2 = pl.pallas_call(
        functools.partial(_stats2_kernel, npc=npc, tile_b=stats_tile_b,
                          n_valid=B, inv_n=inv_n),
        grid=(NCORES, npc),
        out_shape=(jax.ShapeDtypeStruct((stat_rows, HL_2), jnp.float32),
                   jax.ShapeDtypeStruct((stat_rows, HL_2), jnp.float32)),
        in_specs=[pl.BlockSpec((stats_tile_b, INPUT_SIZE), x_map),
                  pl.BlockSpec((stat_rows, HL_1), const2),
                  pl.BlockSpec((stat_rows, HL_1), const2),
                  pl.BlockSpec((INPUT_SIZE, HL_1), const2),
                  pl.BlockSpec((1, HL_1), const2),
                  pl.BlockSpec((HL_1, HL_2), const2),
                  pl.BlockSpec((1, HL_2), const2)],
        out_specs=(pl.BlockSpec((8, HL_2), core_out),
                   pl.BlockSpec((8, HL_2), core_out)),
        compiler_params=stats_params,
        cost_estimate=pl.CostEstimate(
            flops=int(2 * B * (INPUT_SIZE * HL_1 + HL_1 * HL_2)
                      + 6 * B * (HL_1 + HL_2)),
            transcendentals=int(B * (HL_1 + HL_2)),
            bytes_accessed=int(bytes_x + 4 * ((INPUT_SIZE + 1) * HL_1
                                              + (HL_1 + 1) * HL_2
                                              + 2 * stat_rows * (HL_1 + HL_2)))),
    )(x, sum1, sq1, w1, b1, w2f, b2f)

    # --- pass 3: normalize + final Linear, exact (B, 153) output ------------
    out_tile_b = _round_up(max(8, min(int(out_tile_b), _round_up(B, 8))), 8)
    nbt = pl.cdiv(B, out_tile_b)
    bmap = lambda i: (i, 0)
    const1 = lambda i: (0, 0)

    w_bytes = ((INPUT_SIZE + 1) * HL_1 + (HL_1 + 1) * HL_2
               + (HL_2 + 1) * OUT_DIM + 2 * stat_rows * (HL_1 + HL_2))
    out = pl.pallas_call(
        functools.partial(_final_kernel, inv_n=inv_n),
        grid=(nbt,),
        out_shape=jax.ShapeDtypeStruct((B, OUT_DIM), jnp.float32),
        in_specs=[pl.BlockSpec((out_tile_b, INPUT_SIZE), bmap),
                  pl.BlockSpec((stat_rows, HL_1), const1),
                  pl.BlockSpec((stat_rows, HL_1), const1),
                  pl.BlockSpec((stat_rows, HL_2), const1),
                  pl.BlockSpec((stat_rows, HL_2), const1),
                  pl.BlockSpec((INPUT_SIZE, HL_1), const1),
                  pl.BlockSpec((1, HL_1), const1),
                  pl.BlockSpec((HL_1, HL_2), const1),
                  pl.BlockSpec((1, HL_2), const1),
                  pl.BlockSpec((HL_2, OUT_DIM), const1),
                  pl.BlockSpec((1, OUT_DIM), const1)],
        out_specs=pl.BlockSpec((out_tile_b, OUT_DIM), bmap),
        compiler_params=pltpu.CompilerParams(
            dimension_semantics=("parallel",),
            vmem_limit_bytes=VMEM_LIMIT_BYTES),
        cost_estimate=pl.CostEstimate(
            flops=int(2 * B * (INPUT_SIZE * HL_1 + HL_1 * HL_2
                               + HL_2 * OUT_DIM)),
            transcendentals=int(B * (HL_1 + HL_2)),
            bytes_accessed=int(4 * (B * (INPUT_SIZE + OUT_DIM) + w_bytes))),
    )(x, sum1, sq1, sum2, sq2, w1, b1, w2f, b2f, w3f, b3f)
    return out


# ---------------------------------------------------------------------------
# Host-side parameter prep (run ONCE) + public forward.
# ---------------------------------------------------------------------------
def _fold_bn_affine(gamma, beta, w, b):
    """Fold a preceding BatchNorm affine (gamma, beta) into Linear(w:[in,out], b:[1,out]).

    (xhat * g + be) @ W + b == xhat @ (g[:, None] * W) + (be @ W + b)
    """
    w_f = w * gamma.reshape(-1, 1)
    b_f = beta.reshape(1, -1) @ w + b
    return w_f, b_f


def fold_params(params):
    """Hoisted per-model prep: fold BN affines into the following Linears once."""
    (w1, b1, g1, be1, w2, b2, g2, be2, w3, b3) = params
    w2f, b2f = _fold_bn_affine(g1, be1, w2, b2)
    w3f, b3f = _fold_bn_affine(g2, be2, w3, b3)
    return (w1, b1, w2f, b2f, w3f, b3f)


def distributional_forward(x, folded_params, *, fused_max_b=FUSED_MAX_B,
                           stats_tile_b=STATS_TILE_B, out_tile_b=OUT_TILE_B):
    """x: [B, INPUT_SIZE] float32. Returns [B, OUT_DIM] float32 (no post-slices)."""
    B = x.shape[0]
    if B <= fused_max_b:
        return _forward_fused(x, folded_params)
    return _forward_tiled(x, folded_params, stats_tile_b=stats_tile_b,
                          out_tile_b=out_tile_b)


def init_params(key):
    """Deterministic synthetic parameters with the module's shapes.

    Linear weights are stored as [in, out] (transposed vs. PyTorch's [out, in]);
    biases / BN params as [1, features] rows.  BN gamma/beta get non-trivial
    values so the host-side affine folding is actually exercised.
    """
    ks = jax.random.split(key, 10)
    w1 = jax.random.normal(ks[0], (INPUT_SIZE, HL_1), jnp.float32) * 0.2
    b1 = jax.random.normal(ks[1], (1, HL_1), jnp.float32) * 0.05
    w2 = jax.random.normal(ks[2], (HL_1, HL_2), jnp.float32) * 0.2
    b2 = jax.random.normal(ks[3], (1, HL_2), jnp.float32) * 0.05
    w3 = jax.random.normal(ks[4], (HL_2, OUT_DIM), jnp.float32) * 0.2
    b3 = jax.random.normal(ks[5], (1, OUT_DIM), jnp.float32) * 0.05
    g1 = 1.0 + 0.1 * jax.random.normal(ks[6], (1, HL_1), jnp.float32)
    be1 = 0.1 * jax.random.normal(ks[7], (1, HL_1), jnp.float32)
    g2 = 1.0 + 0.1 * jax.random.normal(ks[8], (1, HL_2), jnp.float32)
    be2 = 0.1 * jax.random.normal(ks[9], (1, HL_2), jnp.float32)
    return (w1, b1, g1, be1, w2, b2, g2, be2, w3, b3)


def reference_forward(x, params):
    """Plain-JAX reference mirroring the PyTorch module (training-mode BN)."""
    (w1, b1, g1, be1, w2, b2, g2, be2, w3, b3) = params

    def bn(a, g, be):
        mean = jnp.mean(a, axis=0, keepdims=True)
        var = jnp.mean((a - mean) ** 2, axis=0, keepdims=True)   # biased, as PyTorch
        return (a - mean) / jnp.sqrt(var + BN_EPS) * g + be

    h1 = bn(_gelu_exact(x @ w1 + b1), g1, be1)
    h2 = bn(_gelu_exact(h1 @ w2 + b2), g2, be2)
    return h2 @ w3 + b3


if __name__ == "__main__":
    key = jax.random.PRNGKey(0)
    kx, kp, kx2, kx3 = jax.random.split(key, 4)
    params = init_params(kp)
    folded = jax.tree.map(jax.block_until_ready, fold_params(params))  # once

    # 1) Small batch -> fused single-launch path (exact (B, 153) output).
    B = 8
    x = jax.random.normal(kx, (B, INPUT_SIZE), jnp.float32)
    out = jax.block_until_ready(distributional_forward(x, folded))
    ref = reference_forward(x, params)
    assert out.shape == (B, OUT_DIM)
    assert jnp.allclose(out, ref, atol=1e-4, rtol=1e-4), "fused path mismatch"

    # 2) Tiled 3-pass path with small tiles: even tile count per core + a
    #    ragged boundary tile (exercises masked stats + per-core partials).
    B2 = 100
    x2 = jax.random.normal(kx2, (B2, INPUT_SIZE), jnp.float32)
    out2 = jax.block_until_ready(
        distributional_forward(x2, folded, fused_max_b=0,
                               stats_tile_b=32, out_tile_b=32))
    ref2 = reference_forward(x2, params)
    assert out2.shape == (B2, OUT_DIM)
    assert jnp.allclose(out2, ref2, atol=1e-4, rtol=1e-4), "tiled path mismatch"

    # 3) Tiled path with an odd tile count: exercises the clamped duplicate
    #    tile (fully masked from statistics) on the second core.
    B3 = 70
    x3 = jax.random.normal(kx3, (B3, INPUT_SIZE), jnp.float32)
    out3 = jax.block_until_ready(
        distributional_forward(x3, folded, fused_max_b=0,
                               stats_tile_b=24, out_tile_b=24))
    ref3 = reference_forward(x3, params)
    assert out3.shape == (B3, OUT_DIM)
    assert jnp.allclose(out3, ref3, atol=1e-4, rtol=1e-4), "tiled (odd) mismatch"

    print("KERNEL_OK")
</pallas_src>

<mosaic_0001>
module attributes {stable_mosaic.version = 11 : i64} {
  func.func @_fused_kernel(%arg0: memref<8x6xf32, #tpu.memory_space<vmem>>, %arg1: memref<6x16xf32, #tpu.memory_space<vmem>>, %arg2: memref<1x16xf32, #tpu.memory_space<vmem>>, %arg3: memref<16x32xf32, #tpu.memory_space<vmem>>, %arg4: memref<1x32xf32, #tpu.memory_space<vmem>>, %arg5: memref<32x153xf32, #tpu.memory_space<vmem>>, %arg6: memref<1x153xf32, #tpu.memory_space<vmem>>, %arg7: memref<8x153xf32, #tpu.memory_space<vmem>>) attributes {dimension_semantics = [], scalar_prefetch = 0 : i64, scratch_operands = 0 : i64, tpu.core_type = #tpu.core_type<tc>} {
    %c0 = arith.constant 0 : index
    %c0_0 = arith.constant 0 : index
    %0 = vector.load %arg0[%c0, %c0_0] : memref<8x6xf32, #tpu.memory_space<vmem>>, vector<8x6xf32>
    %c0_1 = arith.constant 0 : index
    %c0_2 = arith.constant 0 : index
    %1 = vector.load %arg1[%c0_1, %c0_2] : memref<6x16xf32, #tpu.memory_space<vmem>>, vector<6x16xf32>
    %cst = arith.constant dense<0.000000e+00> : vector<8x16xf32>
    %2 = tpu.matmul %0, %1, %cst {dimension_numbers = #tpu.dot_dimension_numbers<[1], [0], [0], [1], [0, 0, 1, 1], [], []>} : vector<8x6xf32>, vector<6x16xf32>, vector<8x16xf32> -> vector<8x16xf32>
    %c0_3 = arith.constant 0 : index
    %c0_4 = arith.constant 0 : index
    %3 = vector.load %arg2[%c0_3, %c0_4] : memref<1x16xf32, #tpu.memory_space<vmem>>, vector<1x16xf32>
    %4 = vector.broadcast %3 : vector<1x16xf32> to vector<8x16xf32>
    %5 = arith.addf %2, %4 : vector<8x16xf32>
    %cst_5 = arith.constant 5.000000e-01 : f32
    %6 = vector.broadcast %cst_5 : f32 to vector<8x16xf32>
    %7 = arith.mulf %6, %5 : vector<8x16xf32>
    %cst_6 = arith.constant 0.707106769 : f32
    %8 = vector.broadcast %cst_6 : f32 to vector<8x16xf32>
    %9 = arith.mulf %5, %8 : vector<8x16xf32>
    %10 = math.erf %9 : vector<8x16xf32>
    %cst_7 = arith.constant 1.000000e+00 : f32
    %11 = vector.broadcast %cst_7 : f32 to vector<8x16xf32>
    %12 = arith.addf %11, %10 : vector<8x16xf32>
    %13 = arith.mulf %7, %12 : vector<8x16xf32>
    %cst_8 = arith.constant dense<0.000000e+00> : vector<16xf32>
    %14 = vector.multi_reduction <add>, %13, %cst_8 [0] : vector<8x16xf32> to vector<16xf32>
    %15 = vector.shape_cast %14 : vector<16xf32> to vector<1x16xf32>
    %cst_9 = arith.constant 1.250000e-01 : f32
    %16 = vector.broadcast %cst_9 : f32 to vector<1x16xf32>
    %17 = arith.mulf %15, %16 : vector<1x16xf32>
    %18 = vector.broadcast %17 : vector<1x16xf32> to vector<8x16xf32>
    %19 = arith.subf %13, %18 : vector<8x16xf32>
    %20 = arith.mulf %19, %19 : vector<8x16xf32>
    %cst_10 = arith.constant dense<0.000000e+00> : vector<16xf32>
    %21 = vector.multi_reduction <add>, %20, %cst_10 [0] : vector<8x16xf32> to vector<16xf32>
    %22 = vector.shape_cast %21 : vector<16xf32> to vector<1x16xf32>
    %cst_11 = arith.constant 1.250000e-01 : f32
    %23 = vector.broadcast %cst_11 : f32 to vector<1x16xf32>
    %24 = arith.mulf %22, %23 : vector<1x16xf32>
    %cst_12 = arith.constant 9.99999974E-6 : f32
    %25 = vector.broadcast %cst_12 : f32 to vector<1x16xf32>
    %26 = arith.addf %24, %25 : vector<1x16xf32>
    %27 = math.rsqrt %26 : vector<1x16xf32>
    %28 = vector.broadcast %27 : vector<1x16xf32> to vector<8x16xf32>
    %29 = arith.mulf %19, %28 : vector<8x16xf32>
    %c0_13 = arith.constant 0 : index
    %c0_14 = arith.constant 0 : index
    %30 = vector.load %arg3[%c0_13, %c0_14] : memref<16x32xf32, #tpu.memory_space<vmem>>, vector<16x32xf32>
    %cst_15 = arith.constant dense<0.000000e+00> : vector<8x32xf32>
    %31 = tpu.matmul %29, %30, %cst_15 {dimension_numbers = #tpu.dot_dimension_numbers<[1], [0], [0], [1], [0, 0, 1, 1], [], []>} : vector<8x16xf32>, vector<16x32xf32>, vector<8x32xf32> -> vector<8x32xf32>
    %c0_16 = arith.constant 0 : index
    %c0_17 = arith.constant 0 : index
    %32 = vector.load %arg4[%c0_16, %c0_17] : memref<1x32xf32, #tpu.memory_space<vmem>>, vector<1x32xf32>
    %33 = vector.broadcast %32 : vector<1x32xf32> to vector<8x32xf32>
    %34 = arith.addf %31, %33 : vector<8x32xf32>
    %cst_18 = arith.constant 5.000000e-01 : f32
    %35 = vector.broadcast %cst_18 : f32 to vector<8x32xf32>
    %36 = arith.mulf %35, %34 : vector<8x32xf32>
    %cst_19 = arith.constant 0.707106769 : f32
    %37 = vector.broadcast %cst_19 : f32 to vector<8x32xf32>
    %38 = arith.mulf %34, %37 : vector<8x32xf32>
    %39 = math.erf %38 : vector<8x32xf32>
    %cst_20 = arith.constant 1.000000e+00 : f32
    %40 = vector.broadcast %cst_20 : f32 to vector<8x32xf32>
    %41 = arith.addf %40, %39 : vector<8x32xf32>
    %42 = arith.mulf %36, %41 : vector<8x32xf32>
    %cst_21 = arith.constant dense<0.000000e+00> : vector<32xf32>
    %43 = vector.multi_reduction <add>, %42, %cst_21 [0] : vector<8x32xf32> to vector<32xf32>
    %44 = vector.shape_cast %43 : vector<32xf32> to vector<1x32xf32>
    %cst_22 = arith.constant 1.250000e-01 : f32
    %45 = vector.broadcast %cst_22 : f32 to vector<1x32xf32>
    %46 = arith.mulf %44, %45 : vector<1x32xf32>
    %47 = vector.broadcast %46 : vector<1x32xf32> to vector<8x32xf32>
    %48 = arith.subf %42, %47 : vector<8x32xf32>
    %49 = arith.mulf %48, %48 : vector<8x32xf32>
    %cst_23 = arith.constant dense<0.000000e+00> : vector<32xf32>
    %50 = vector.multi_reduction <add>, %49, %cst_23 [0] : vector<8x32xf32> to vector<32xf32>
    %51 = vector.shape_cast %50 : vector<32xf32> to vector<1x32xf32>
    %cst_24 = arith.constant 1.250000e-01 : f32
    %52 = vector.broadcast %cst_24 : f32 to vector<1x32xf32>
    %53 = arith.mulf %51, %52 : vector<1x32xf32>
    %cst_25 = arith.constant 9.99999974E-6 : f32
    %54 = vector.broadcast %cst_25 : f32 to vector<1x32xf32>
    %55 = arith.addf %53, %54 : vector<1x32xf32>
    %56 = math.rsqrt %55 : vector<1x32xf32>
    %57 = vector.broadcast %56 : vector<1x32xf32> to vector<8x32xf32>
    %58 = arith.mulf %48, %57 : vector<8x32xf32>
    %c0_26 = arith.constant 0 : index
    %c0_27 = arith.constant 0 : index
    %59 = vector.load %arg5[%c0_26, %c0_27] : memref<32x153xf32, #tpu.memory_space<vmem>>, vector<32x153xf32>
    %cst_28 = arith.constant dense<0.000000e+00> : vector<8x153xf32>
    %60 = tpu.matmul %58, %59, %cst_28 {dimension_numbers = #tpu.dot_dimension_numbers<[1], [0], [0], [1], [0, 0, 1, 1], [], []>} : vector<8x32xf32>, vector<32x153xf32>, vector<8x153xf32> -> vector<8x153xf32>
    %c0_29 = arith.constant 0 : index
    %c0_30 = arith.constant 0 : index
    %61 = vector.load %arg6[%c0_29, %c0_30] : memref<1x153xf32, #tpu.memory_space<vmem>>, vector<1x153xf32>
    %62 = vector.broadcast %61 : vector<1x153xf32> to vector<8x153xf32>
    %63 = arith.addf %60, %62 : vector<8x153xf32>
    %c0_31 = arith.constant 0 : index
    %c0_32 = arith.constant 0 : index
    %64 = vector.load %arg7[%c0_31, %c0_32] : memref<8x153xf32, #tpu.memory_space<vmem>>, vector<8x153xf32>
    tpu.vector_store %arg7[%c0_31, %c0_32], %63 {strides = array<i32>} : memref<8x153xf32, #tpu.memory_space<vmem>>, vector<8x153xf32>,
    return
  }
}

</mosaic_0001>

<bundles_post_ra>
// kernel: tpu_custom_call.1
= control target key start
LH: loop header
LB: loop body
LE: loop exit
PB: predicated region body
PF: predicated region fallthrough
CT: control target
= control target key end

     0   :  { %12 = vsyncpa [#allocation3], 0  ;;  %s651_s0 = inlined_call_operand.hbm [shape: f32[8,6], index: 0, kind: input, shape index: {}]   ;;  %s652_s1 = inlined_call_operand.hbm [shape: f32[6,16], index: 1, kind: input, shape index: {}]   ;;  %s653_s2 = inlined_call_operand.vmem [shape: f32[1,16], index: 2, kind: input, shape index: {}]   ;;  %s654_s3 = inlined_call_operand.hbm [shape: f32[16,32], index: 3, kind: input, shape index: {}]   ;;  %s655_s4 = inlined_call_operand.hbm [shape: f32[1,32], index: 4, kind: input, shape index: {}]   ;;  %s656_s5 = inlined_call_operand.hbm [shape: f32[32,153], index: 5, kind: input, shape index: {}]   ;;  %s657_s6 = inlined_call_operand.vmem [shape: f32[1,153], index: 6, kind: input, shape index: {}]   ;;  %s658_s7 = inlined_call_operand.hbm [shape: f32[8,153], index: 7, kind: output, shape index: {}]  }
   0x1   :  { %13 = vsyncpa [#allocation6], 0 }
   0x2   :  { %14 = vsyncpa [#allocation9], 0  ;;  %s32_s26 = sshll.u32 %s652_s1, 4  ;;  %s33_s26 = int_to_ptr.hbm [resolvable:$true] %s32_s26 }
   0x3   :  { %15 = vsyncpa [#allocation4], 0  ;;  %s570_s27 = smov [#allocation5]   ;;  %s58_s8 = sshll.u32 %s655_s4, 4  ;;  %s59_s8 = int_to_ptr.hbm [resolvable:$true] %s58_s8 }
   0x4   :  { %s34_s28 = sshll.u32 %s570_s27, 4  ;;  %s571_s9 = smov [#allocation8]   ;;  %s35_s28 = int_to_ptr.vmem [resolvable:$true] %s34_s28 }
   0x5   :  { %37 = dma.hbm_to_vmem [thread:$0]  %s33_s26, 128, %s35_s28, [#allocation6]  }
   0x6   :  { %s60_s10 = sshll.u32 %s571_s9, 4  ;;  %s21_s13 = sshll.u32 %s651_s0, 4  ;;  %s61_s10 = int_to_ptr.vmem [resolvable:$true] %s60_s10  ;;  %s22_s13 = int_to_ptr.hbm [resolvable:$true] %s21_s13 }
   0x7   :  { %63 = dma.hbm_to_vmem [thread:$0]  %s59_s8, 16, %s61_s10, [#allocation9]  }
   0x8   :  { %s44_s15 = sshll.u32 %s654_s3, 4  ;;  %s572_s16 = smov [#allocation2]   ;;  %s45_s15 = int_to_ptr.hbm [resolvable:$true] %s44_s15 }
   0x9   :  { %s23_s17 = sshll.u32 %s572_s16, 4  ;;  %s573_s4 = smov [#allocation7]   ;;  %s24_s17 = int_to_ptr.vmem [resolvable:$true] %s23_s17 }
   0xa   :  { %26 = dma.hbm_to_vmem [thread:$0]  %s22_s13, 128, %s24_s17, [#allocation3]  }
   0xb   :  { %s46_s18 = sshll.u32 %s573_s4, 4  ;;  %s574_s19 = smov 128   ;;  %s47_s18 = int_to_ptr.vmem [resolvable:$true] %s46_s18 }
   0xc   :  { %s575_s20 = smov 8   ;;  %s68_s22 = sshll.u32 %s656_s5, 4  ;;  %s69_s22 = int_to_ptr.hbm [resolvable:$true] %s68_s22 }
   0xd   :  { %52 = dma.hbm_to_vmem [thread:$0]  %s45_s15, 256, %s47_s18, [#allocation6], %s574_s19, %s574_s19, %s575_s20  }
   0xe   :  { %s576_s23 = smov [#allocation10]   ;;  %s577_s3 = smov 256  }
   0xf   :  { %s70_s24 = sshll.u32 %s576_s23, 4  ;;  %s578_s25 = smov 16   ;;  %s71_s24 = int_to_ptr.vmem [resolvable:$true] %s70_s24 }
  0x10   :  { %76 = dma.hbm_to_vmem [thread:$0]  %s69_s22, 1024, %s71_s24, [#allocation9], %s577_s3, %s577_s3, %s578_s25  }
  0x11   :  { %562 = dma.done.wait [#allocation3], 128  }
  0x12   :  { %563 = vsyncadd [#allocation3], 4294967168 }
  0x13   :  { %564 = dma.done.wait [#allocation6], 384  }
  0x14   :  { %565 = vsyncadd [#allocation6], 4294966912 }
  0x15   :  { %566 = dma.done.wait [#allocation9], 1040  }
  0x16   :  { %567 = vsyncadd [#allocation9], 4294966256  ;;  %vm109_vm0 = vcmask 1045504   ;;  %vm105_vm1 = vcmask 48128   ;;  %v100_v0 = vld [vmem:[#allocation5] sm:$0x3f] }
  0x17   :  { %v99_v1 = vld [vmem:[#allocation2] sm:$0xff]  ;;  %391 = vmatpush.msk.msra.mxu0 %vm109_vm0, %v100_v0  ;;  %v209_v19 = vld [vmem:[#allocation7 + $0x8] sm:$0xff]  ;;  %v208_v20 = vld [vmem:[#allocation7] sm:$0xff]  ;;  %vm177_vm6 = vcmask 130048   ;;  %vm281_vm14 = vcmask 261120   ;;  %s579_s28 = smov [#allocation11]  }
  0x18   :  { %392 = vmatmul.msk.f32.vlgmr.msra.gmra.mxu0 %vm105_vm1, %v99_v1  ;;  %v408_v2 = vld [vmem:[%s653_s2] ss:$0 sm:$0xff]  ;;  %231 = vmatpush.msra.mxu1 %v209_v19  ;;  %s377_s29 = sshll.u32 %s579_s28, 4  ;;  %s379_s9 = sshll.u32 %s658_s7, 4  ;;  %s378_s29 = int_to_ptr.vmem [resolvable:$true] %s377_s29  ;;  %s380_s9 = int_to_ptr.hbm [resolvable:$true] %s379_s9 }
  0x1a   :  { %232 = vmatpush.msra.mxu1 %v208_v20 }
  0x95   :  { %v130_v3 = vpop.f32.mrf.mxu0 }
  0x96   :  { %v131_v4 = vadd.f32 %v408_v2, %v130_v3 }
  0x98   :  { %v134_v5 = vmul.f32 0.70710677, %v131_v4  ;;  %v133_v43 = vmul.f32 0.5, %v131_v4 }
  0x9a   :  { %v135_v6 = vmul.f32 %v134_v5, %v134_v5 }
  0x9c   :  { %v136_v7 = vmin.f32 %v135_v6, 16.0 }
  0x9e   :  { %v137_v8 = vmul.f32 2.1237322e-06, %v136_v7  ;;  %v148_v9 = vmul.f32 3.8918573e-05, %v136_v7 }
  0xa0   :  { %v138_v10 = vadd.f32 0.00028619796, %v137_v8  ;;  %v149_v11 = vadd.f32 0.001143296, %v148_v9  ;;  %v409_v9 = vld [vmem:[#allocation8] ss:$0 sm:$0xff] }
  0xa2   :  { %v139_v12 = vmul.f32 %v138_v10, %v136_v7  ;;  %v150_v13 = vmul.f32 %v149_v11, %v136_v7 }
  0xa4   :  { %v151_v14 = vadd.f32 0.014752088, %v150_v13  ;;  %v140_v15 = vadd.f32 0.0036580483, %v139_v12 }
  0xa6   :  { %v152_v16 = vmul.f32 %v151_v14, %v136_v7  ;;  %v141_v18 = vmul.f32 %v140_v15, %v136_v7 }
  0xa8   :  { %v153_v17 = vadd.f32 0.112945676, %v152_v16  ;;  %v142_v23 = vadd.f32 0.05243302, %v141_v18 }
  0xaa   :  { %v154_v21 = vmul.f32 %v153_v17, %v136_v7  ;;  %v143_v26 = vmul.f32 %v142_v23, %v136_v7 }
  0xac   :  { %v155_v22 = vadd.f32 0.4994258, %v154_v21  ;;  %v144_v27 = vadd.f32 0.18741608, %v143_v26  ;;  %v318_v26 = vld [vmem:[#allocation10 + $0x30] sm:$0xff] }
  0xad   :  { %341 = vmatpush.msra.mxu2 %v318_v26 }
  0xae   :  { %v156_v24 = vmul.f32 %v155_v22, %v136_v7  ;;  %v145_v29 = vmul.f32 %v144_v27, %v136_v7  ;;  %v319_v27 = vld [vmem:[#allocation10 + $0x38] sm:$0xff] }
  0xaf   :  { %361 = vmatpush.msra.mxu3 %v319_v27 }
  0xb0   :  { %v157_v25 = vadd.f32 1.0, %v156_v24  ;;  %v146_v33 = vadd.f32 1.1283791, %v145_v29 }
  0xb2   :  { %410 = vrcp.f32 %v157_v25  ;;  %v169_v32 = vand.u32 2147483648, %v157_v25  ;;  %v167_v35 = vand.u32 2147483647, %v157_v25  ;;  %vm163_vm3 = vweird.f32 %v157_v25 }
  0xb3   :  { %v147_v38 = vmul.f32 %v146_v33, %v134_v5 }
  0xb4   :  { %v170_v37 = vor.u32 1.1754944e-38, %v169_v32  ;;  %vm168_vm5 = vcmp.eq.f32.partialorder %v167_v35, 8.507059e+37  ;;  %v315_v32 = vld [vmem:[#allocation10 + $0x18] sm:$0xff]  ;;  %v312_v35 = vld [vmem:[#allocation10] sm:$0xff] }
  0xb8   :  { %v411_v28 = vpop.eup %410 }
  0xb9   :  { %v159_v30 = vmul.f32 %v411_v28, %v157_v25  ;;  %vm164_vm2 = vweird.f32 %v411_v28 }
  0xba   :  { %vm165_vm4 = vmor %vm163_vm3, %vm164_vm2  ;;  %vm370_vm2 = vcmask 203776  }
  0xbb   :  { %v160_v31 = vsub.f32 1.0, %v159_v30  ;;  %v317_v30 = vld [vmem:[#allocation10 + $0x28] sm:$0xff] }
  0xbc   :  { %362 = vmatpush.msra.mxu3 %v317_v30 }
  0xbd   :  { %v161_v34 = vmul.f32 %v411_v28, %v160_v31  ;;  %v314_v31 = vld [vmem:[#allocation10 + $0x10] sm:$0xff] }
  0xbe   :  { %363 = vmatpush.msra.mxu3 %v315_v32 }
  0xbf   :  { %v162_v36 = vadd.f32 %v411_v28, %v161_v34 }
  0xc1   :  { %v166_v39 = vsel %vm165_vm4, %v411_v28, %v162_v36  ;;  %v316_v28 = vld [vmem:[#allocation10 + $0x20] sm:$0xff]  ;;  %v313_v36 = vld [vmem:[#allocation10 + $0x8] sm:$0xff] }
  0xc2   :  { %v171_v40 = vsel %vm168_vm5, %v170_v37, %v166_v39  ;;  %342 = vmatpush.msra.mxu2 %v316_v28  ;;  %364 = vmatpush.msra.mxu3 %v313_v36 }
  0xc3   :  { %v172_v41 = vmul.f32 %v171_v40, %v147_v38 }
  0xc4   :  { %343 = vmatpush.msra.mxu2 %v314_v31 }
  0xc5   :  { %v393_v42 = vclamps-f32 %v172_v41, 1.0 }
  0xc6   :  { %344 = vmatpush.msra.mxu2 %v312_v35 }
  0xc7   :  { %v175_v44 = vadd.f32 1.0, %v393_v42 }
  0xc9   :  { %v176_v45 = vmul.f32 %v175_v44, %v133_v43 }
  0xcb   :  { %v178_v46 = vsel %vm177_vm6, %v176_v45, 0.0 }
  0xcc   :  { %v179_v47 = vrot.slane %v178_v46, 4 }
  0xce   :  { %v180_v48 = vadd.f32 %v179_v47, %v178_v46 }
  0xd0   :  { %v181_v49 = vrot.slane %v180_v48, 2 }
  0xd2   :  { %v182_v50 = vadd.f32 %v181_v49, %v180_v48 }
  0xd4   :  { %v183_v51 = vrot.slane %v182_v50, 1 }
  0xd6   :  { %v184_v52 = vadd.f32 %v183_v51, %v182_v50 }
  0xd8   :  { %v185_v53 = vmul.f32 0.125, %v184_v52 }
  0xda   :  { %v186_v54 = vsub.f32 %v176_v45, %v185_v53 }
  0xdc   :  { %v187_v55 = vmul.f32 %v186_v54, %v186_v54 }
  0xde   :  { %v188_v56 = vsel %vm177_vm6, %v187_v55, 0.0 }
  0xdf   :  { %v189_v57 = vrot.slane %v188_v56, 4 }
  0xe1   :  { %v190_v58 = vadd.f32 %v189_v57, %v188_v56 }
  0xe3   :  { %v191_v59 = vrot.slane %v190_v58, 2 }
  0xe5   :  { %v192_v60 = vadd.f32 %v191_v59, %v190_v58 }
  0xe7   :  { %v193_v61 = vrot.slane %v192_v60, 1 }
  0xe9   :  { %v194_v62 = vadd.f32 %v193_v61, %v192_v60 }
  0xeb   :  { %v195_v63 = vmul.f32 0.125, %v194_v62 }
  0xed   :  { %v196_v0 = vadd.f32 1e-05, %v195_v63 }
  0xef   :  { %412 = vrsqrt.f32 %v196_v0  ;;  %vm203_vm8 = vweird.f32 %v196_v0 }
  0xf5   :  { %v413_v1 = vpop.eup %412 }
  0xf6   :  { %v198_v2 = vmul.f32 %v413_v1, %v196_v0  ;;  %vm204_vm7 = vweird.f32 %v413_v1 }
  0xf7   :  { %vm205_vm9 = vmor %vm203_vm8, %vm204_vm7 }
  0xf8   :  { %v199_v3 = vmul.f32 %v413_v1, %v198_v2 }
  0xfa   :  { %v200_v4 = vmul.f32 0.5, %v199_v3 }
  0xfc   :  { %v201_v5 = vsub.f32 1.5, %v200_v4 }
  0xfe   :  { %v202_v6 = vmul.f32 %v413_v1, %v201_v5 }
 0x100   :  { %v206_v7 = vsel %vm205_vm9, %v413_v1, %v202_v6 }
 0x101   :  { %v207_v8 = vmul.f32 %v206_v7, %v186_v54 }
 0x103   :  { %394 = vmatmul.msk.f32.vlgmr.msra.gmra.mxu1 %vm177_vm6, %v207_v8 }
 0x180   :  { %v234_v10 = vpop.f32.mrf.mxu1 }
 0x181   :  { %v235_v11 = vadd.f32 %v409_v9, %v234_v10 }
 0x183   :  { %v238_v12 = vmul.f32 0.70710677, %v235_v11  ;;  %v237_v56 = vmul.f32 0.5, %v235_v11 }
 0x185   :  { %v239_v13 = vmul.f32 %v238_v12, %v238_v12 }
 0x187   :  { %v240_v14 = vmin.f32 %v239_v13, 16.0 }
 0x189   :  { %v241_v15 = vmul.f32 2.1237322e-06, %v240_v14  ;;  %v252_v16 = vmul.f32 3.8918573e-05, %v240_v14 }
 0x18b   :  { %v242_v17 = vadd.f32 0.00028619796, %v241_v15  ;;  %v253_v18 = vadd.f32 0.001143296, %v252_v16 }
 0x18d   :  { %v243_v19 = vmul.f32 %v242_v17, %v240_v14  ;;  %v254_v20 = vmul.f32 %v253_v18, %v240_v14 }
 0x18f   :  { %v255_v21 = vadd.f32 0.014752088, %v254_v20  ;;  %v244_v22 = vadd.f32 0.0036580483, %v243_v19 }
 0x191   :  { %v256_v23 = vmul.f32 %v255_v21, %v240_v14  ;;  %v245_v25 = vmul.f32 %v244_v22, %v240_v14  ;;  %v320_v22 = vld [vmem:[%s657_s6] sm:$0x3] }
 0x193   :  { %v257_v24 = vadd.f32 0.112945676, %v256_v23  ;;  %v246_v34 = vadd.f32 0.05243302, %v245_v25  ;;  %v322_v23 = vperm.slane %v320_v22, 0 }
 0x195   :  { %v258_v29 = vmul.f32 %v257_v24, %v240_v14  ;;  %v247_v39 = vmul.f32 %v246_v34, %v240_v14  ;;  %v323_v24 = vperm.slane %v320_v22, 1 }
 0x197   :  { %v259_v33 = vadd.f32 0.4994258, %v258_v29  ;;  %v248_v40 = vadd.f32 0.18741608, %v247_v39 }
 0x199   :  { %v260_v37 = vmul.f32 %v259_v33, %v240_v14  ;;  %v249_v42 = vmul.f32 %v248_v40, %v240_v14 }
 0x19b   :  { %v261_v38 = vadd.f32 1.0, %v260_v37  ;;  %v250_v46 = vadd.f32 1.1283791, %v249_v42 }
 0x19d   :  { %414 = vrcp.f32 %v261_v38  ;;  %v273_v45 = vand.u32 2147483648, %v261_v38  ;;  %v271_v48 = vand.u32 2147483647, %v261_v38  ;;  %vm267_vm11 = vweird.f32 %v261_v38 }
 0x19e   :  { %v251_v51 = vmul.f32 %v250_v46, %v238_v12 }
 0x19f   :  { %v274_v50 = vor.u32 1.1754944e-38, %v273_v45  ;;  %vm272_vm13 = vcmp.eq.f32.partialorder %v271_v48, 8.507059e+37 }
 0x1a3   :  { %v415_v41 = vpop.eup %414 }
 0x1a4   :  { %v263_v43 = vmul.f32 %v415_v41, %v261_v38  ;;  %vm268_vm10 = vweird.f32 %v415_v41 }
 0x1a5   :  { %vm269_vm12 = vmor %vm267_vm11, %vm268_vm10 }
 0x1a6   :  { %v264_v44 = vsub.f32 1.0, %v263_v43 }
 0x1a8   :  { %v265_v47 = vmul.f32 %v415_v41, %v264_v44 }
 0x1aa   :  { %v266_v49 = vadd.f32 %v415_v41, %v265_v47 }
 0x1ac   :  { %v270_v52 = vsel %vm269_vm12, %v415_v41, %v266_v49 }
 0x1ad   :  { %v275_v53 = vsel %vm272_vm13, %v274_v50, %v270_v52 }
 0x1ae   :  { %v276_v54 = vmul.f32 %v275_v53, %v251_v51 }
 0x1b0   :  { %v395_v55 = vclamps-f32 %v276_v54, 1.0 }
 0x1b2   :  { %v279_v57 = vadd.f32 1.0, %v395_v55 }
 0x1b4   :  { %v280_v58 = vmul.f32 %v279_v57, %v237_v56 }
 0x1b6   :  { %v282_v59 = vsel %vm281_vm14, %v280_v58, 0.0 }
 0x1b7   :  { %v283_v60 = vrot.slane %v282_v59, 4 }
 0x1b9   :  { %v284_v61 = vadd.f32 %v283_v60, %v282_v59 }
 0x1bb   :  { %v285_v62 = vrot.slane %v284_v61, 2 }
 0x1bd   :  { %v286_v63 = vadd.f32 %v285_v62, %v284_v61 }
 0x1bf   :  { %v287_v0 = vrot.slane %v286_v63, 1 }
 0x1c1   :  { %v288_v1 = vadd.f32 %v287_v0, %v286_v63 }
 0x1c3   :  { %v289_v2 = vmul.f32 0.125, %v288_v1 }
 0x1c5   :  { %v290_v3 = vsub.f32 %v280_v58, %v289_v2 }
 0x1c7   :  { %v291_v4 = vmul.f32 %v290_v3, %v290_v3 }
 0x1c9   :  { %v292_v5 = vsel %vm281_vm14, %v291_v4, 0.0 }
 0x1ca   :  { %v293_v6 = vrot.slane %v292_v5, 4 }
 0x1cc   :  { %v294_v7 = vadd.f32 %v293_v6, %v292_v5 }
 0x1ce   :  { %v295_v8 = vrot.slane %v294_v7, 2 }
 0x1d0   :  { %v296_v9 = vadd.f32 %v295_v8, %v294_v7 }
 0x1d2   :  { %v297_v10 = vrot.slane %v296_v9, 1 }
 0x1d4   :  { %v298_v11 = vadd.f32 %v297_v10, %v296_v9 }
 0x1d6   :  { %v299_v12 = vmul.f32 0.125, %v298_v11 }
 0x1d8   :  { %v300_v13 = vadd.f32 1e-05, %v299_v12 }
 0x1da   :  { %416 = vrsqrt.f32 %v300_v13  ;;  %vm307_vm0 = vweird.f32 %v300_v13 }
 0x1e0   :  { %v417_v14 = vpop.eup %416 }
 0x1e1   :  { %v302_v15 = vmul.f32 %v417_v14, %v300_v13  ;;  %vm308_vm15 = vweird.f32 %v417_v14 }
 0x1e2   :  { %vm309_vm1 = vmor %vm307_vm0, %vm308_vm15 }
 0x1e3   :  { %v303_v16 = vmul.f32 %v417_v14, %v302_v15 }
 0x1e5   :  { %v304_v17 = vmul.f32 0.5, %v303_v16 }
 0x1e7   :  { %v305_v18 = vsub.f32 1.5, %v304_v17 }
 0x1e9   :  { %v306_v19 = vmul.f32 %v417_v14, %v305_v18 }
 0x1eb   :  { %v310_v20 = vsel %vm309_vm1, %v417_v14, %v306_v19 }
 0x1ec   :  { %v311_v21 = vmul.f32 %v310_v20, %v290_v3 }
 0x1ee   :  { %396 = vmatmul.msk.f32.vlgmr.msra.gmra.mxu2 %vm281_vm14, %v311_v21  ;;  %397 = vmatmul.msk.f32.vlgmr.msra.gmra.mxu3 %vm281_vm14, %v311_v21 }
 0x271   :  { %v346_v25 = vpop.f32.mrf.mxu2  ;;  %v366_v26 = vpop.f32.mrf.mxu3 }
 0x272   :  { %v347_v27 = vadd.f32 %v346_v25, %v322_v23  ;;  %v367_v28 = vadd.f32 %v366_v26, %v323_v24 }
 0x274   :  { %369 = vst [vmem:[#allocation11] sm:$0xff] %v347_v27 }
 0x275   :  { %371 = vst.msk [vmem:[#allocation11 + $0x8] sm:$0xff] %vm370_vm2, %v367_v28 }
 0x276   :  { %382 = dma.vmem_to_hbm [thread:$0]  %s378_s29, 256, %s380_s9, [#allocation4]  }
 0x277   :  { %568 = dma.done.wait [#allocation4], 256  }
 0x278   :  { %569 = vsyncadd [#allocation4], 4294967040 }
 0x279   :  { %387 = vsyncpa [#allocation3], 1 }
 0x27a   :  { %388 = vsyncpa [#allocation6], 1 }
 0x27b   :  { %389 = vsyncpa [#allocation9], 1 }
 0x27c   :  { %390 = vsyncpa [#allocation4], 1 }

</bundles_post_ra>
